<compile_context>
chip_gen: v5e
topology: v5e:2x2
jax: 0.10.0
libtpu: 0.0.40
codegen_flags: <defaults>
</compile_context>

<pallas_src>
import functools

import jax
import jax.numpy as jnp
from jax.experimental import pallas as pl
from jax.experimental.pallas import tpu as pltpu


_TARGET_TILE_BYTES = 4 * 1024 * 1024      # ~4 MiB per operand block
_VMEM_LIMIT_BYTES = 48 * 1024 * 1024      # > v5e's 16 MiB default, < v7x's 64 MiB physical
_LANE_CANDIDATES = (512, 256, 128)        # lane-dense last dims (multiples of 128)


def _row_multiple(dtype):
    # Sublane packing: f32 -> 8 rows, bf16/f16 -> 16, int8/fp8 -> 32.
    itemsize = jnp.dtype(dtype).itemsize
    return {4: 8, 2: 16, 1: 32}.get(itemsize, 8)


def _round_up(n, m):
    return ((n + m - 1) // m) * m


def _ema_kernel(x_ref, y_ref, o_ref, *, decay, one_minus_decay):
    # Compute in f32 (safe on all generations incl. v5e), cast back to storage dtype.
    x = x_ref[...].astype(jnp.float32)
    y = y_ref[...].astype(jnp.float32)
    o_ref[...] = (decay * x + one_minus_decay * y).astype(o_ref.dtype)


def ema_forward(x, y, decay):
    """Compute decay * x + (1 - decay) * y with a tiled Pallas TPU kernel.

    x, y: arrays of identical shape/dtype (e.g. NCHW).
    decay: Python float (compile-time constant).
    Returns the updated x.  Wrap with jax.jit(..., donate_argnums=0) so the
    input_output_aliases below turn into a genuine in-place HBM update.
    """
    assert x.shape == y.shape and x.dtype == y.dtype
    orig_shape = x.shape
    total = x.size
    itemsize = jnp.dtype(x.dtype).itemsize
    decay = float(decay)

    kernel = functools.partial(
        _ema_kernel, decay=decay, one_minus_decay=1.0 - decay
    )
    compiler_params = pltpu.CompilerParams(
        dimension_semantics=("parallel",),
        vmem_limit_bytes=_VMEM_LIMIT_BYTES,
    )
    cost = pl.CostEstimate(
        flops=3 * total,                      # 2 mul + 1 add per element
        transcendentals=0,
        bytes_accessed=3 * total * itemsize,  # 2 reads + 1 write
    )

    # Contiguous reshapes below are free bitcasts (no HBM traffic).
    x_flat = x.reshape(-1)
    y_flat = y.reshape(-1)

    lane = next((l for l in _LANE_CANDIDATES if total % l == 0), None)

    if lane is not None:
        # ---- Main path: lane-dense (rows, lane) slab, no element padding. ----
        rows = total // lane
        row_mult = _row_multiple(x.dtype)
        if rows <= row_mult:
            block_rows = rows  # block equals full row dim (allowed)
        else:
            # ~4 MiB tile, but capped so big inputs get >= 4 grid steps
            # (lets v7x's two TensorCores both stream).
            target_rows = max(row_mult, _TARGET_TILE_BYTES // (lane * itemsize))
            cap_rows = max(row_mult, _round_up(pl.cdiv(rows, 4), row_mult))
            block_rows = max(row_mult, min(target_rows, cap_rows))
            block_rows = (block_rows // row_mult) * row_mult

        grid = (pl.cdiv(rows, block_rows),)   # last block may be ragged -> masked
        block_shape = (block_rows, lane)

        x2 = x_flat.reshape(rows, lane)
        y2 = y_flat.reshape(rows, lane)

        out = pl.pallas_call(
            kernel,
            out_shape=jax.ShapeDtypeStruct((rows, lane), x.dtype),
            grid=grid,
            in_specs=[
                pl.BlockSpec(block_shape, lambda i: (i, 0)),  # x tile
                pl.BlockSpec(block_shape, lambda i: (i, 0)),  # y tile
            ],
            out_specs=pl.BlockSpec(block_shape, lambda i: (i, 0)),
            input_output_aliases={0: 0},      # mimic in-place x update
            compiler_params=compiler_params,
            cost_estimate=cost,
        )(x2, y2)
        return out.reshape(orig_shape)

    # ---- Fallback: total not divisible by 128 -> 1-D blocks, still no padding. ----
    block = max(1024, _TARGET_TILE_BYTES // itemsize)  # multiple of 1024 elems
    if total <= block:
        block = total                                   # single full-array block
    grid = (pl.cdiv(total, block),)

    out = pl.pallas_call(
        kernel,
        out_shape=jax.ShapeDtypeStruct((total,), x.dtype),
        grid=grid,
        in_specs=[
            pl.BlockSpec((block,), lambda i: (i,)),
            pl.BlockSpec((block,), lambda i: (i,)),
        ],
        out_specs=pl.BlockSpec((block,), lambda i: (i,)),
        input_output_aliases={0: 0},
        compiler_params=compiler_params,
        cost_estimate=cost,
    )(x_flat, y_flat)
    return out.reshape(orig_shape)


# TODO(synk): EMA.update()/get() are host-side state bookkeeping (clone + store);
# no TPU kernel is needed for them.


if __name__ == "__main__":
    key = jax.random.PRNGKey(0)
    decay = 0.99  # deterministic "parameter" from __init__(decay)

    # Donate x so the in-place PyTorch semantics are real (output aliases x's buffer).
    ema_step = jax.jit(ema_forward, static_argnums=2, donate_argnums=0)

    # Test 1: NCHW shape whose size divides the lane-dense layout (2-D path).
    # Test 2: ragged row count -> masked last grid block inside the kernel.
    # Test 3: element count not divisible by 128 -> 1-D fallback path.
    for shape in [(2, 4, 16, 16), (3, 5, 16, 16), (2, 3, 5, 7)]:
        kx, ky, key = jax.random.split(key, 3)
        x = jax.random.normal(kx, shape, dtype=jnp.float32)
        y = jax.random.normal(ky, shape, dtype=jnp.float32)

        ref = decay * x + (1.0 - decay) * y        # reference before donating x
        out = jax.block_until_ready(ema_step(x, y, decay))

        assert out.shape == shape
        assert jnp.allclose(out, ref, atol=1e-6, rtol=1e-6), f"mismatch for {shape}"

    print("KERNEL_OK")
</pallas_src>

<mosaic_0001>
module attributes {stable_mosaic.version = 11 : i64} {
  func.func @_ema_kernel(%arg0: i32, %arg1: memref<4x512xf32, #tpu.memory_space<vmem>>, %arg2: memref<4x512xf32, #tpu.memory_space<vmem>>, %arg3: memref<4x512xf32, #tpu.memory_space<vmem>>) attributes {dimension_semantics = [#tpu.dimension_semantics<parallel>], iteration_bounds = array<i64: 1>, scalar_prefetch = 0 : i64, scratch_operands = 0 : i64, tpu.core_type = #tpu.core_type<tc>, window_params = [{transform_indices = @transform_0, window_bounds = array<i64: 4, 512>}, {transform_indices = @transform_1, window_bounds = array<i64: 4, 512>}, {transform_indices = @transform_2, window_bounds = array<i64: 4, 512>}]} {
    %c0 = arith.constant 0 : index
    %c0_0 = arith.constant 0 : index
    %0 = vector.load %arg1[%c0, %c0_0] : memref<4x512xf32, #tpu.memory_space<vmem>>, vector<4x512xf32>
    %c0_1 = arith.constant 0 : index
    %c0_2 = arith.constant 0 : index
    %1 = vector.load %arg2[%c0_1, %c0_2] : memref<4x512xf32, #tpu.memory_space<vmem>>, vector<4x512xf32>
    %cst = arith.constant 9.900000e-01 : f32
    %2 = vector.broadcast %cst : f32 to vector<4x512xf32>
    %3 = arith.mulf %2, %0 : vector<4x512xf32>
    %cst_3 = arith.constant 0.00999999977 : f32
    %4 = vector.broadcast %cst_3 : f32 to vector<4x512xf32>
    %5 = arith.mulf %4, %1 : vector<4x512xf32>
    %6 = arith.addf %3, %5 : vector<4x512xf32>
    %c0_4 = arith.constant 0 : index
    %c0_5 = arith.constant 0 : index
    %7 = vector.load %arg3[%c0_4, %c0_5] : memref<4x512xf32, #tpu.memory_space<vmem>>, vector<4x512xf32>
    tpu.vector_store %arg3[%c0_4, %c0_5], %6 {strides = array<i32>} : memref<4x512xf32, #tpu.memory_space<vmem>>, vector<4x512xf32>,
    return
  }
  func.func @transform_0(%arg0: i32) -> (i32, i32) {
    %c0_i32 = arith.constant 0 : i32
    %c0_i32_0 = arith.constant 0 : i32
    return %arg0, %c0_i32 : i32, i32
  }
  func.func @transform_1(%arg0: i32) -> (i32, i32) {
    %c0_i32 = arith.constant 0 : i32
    %c0_i32_0 = arith.constant 0 : i32
    return %arg0, %c0_i32 : i32, i32
  }
  func.func @transform_2(%arg0: i32) -> (i32, i32) {
    %c0_i32 = arith.constant 0 : i32
    %c0_i32_0 = arith.constant 0 : i32
    return %arg0, %c0_i32 : i32, i32
  }
}

</mosaic_0001>

<bundles_post_ra>
// kernel: ema_forward.1
= control target key start
LH: loop header
LB: loop body
LE: loop exit
PB: predicated region body
PF: predicated region fallthrough
CT: control target
= control target key end

     0   :  { %s60_s0 = inlined_call_operand.vmem [shape: f32[4,512], index: 0, kind: input, shape index: {}, may-alias: {0,2}]   ;;  %s61_s1 = inlined_call_operand.vmem [shape: f32[4,512], index: 1, kind: input, shape index: {}]   ;;  %s62_s2 = inlined_call_operand.vmem [shape: f32[4,512], index: 2, kind: output, shape index: {}, may-alias: {0,2}]  }
   0x1   :  { %v11_v0 = vld [vmem:[%s60_s0] sm:$0xff]  ;;  %v12_v2 = vld [vmem:[%s60_s0 + $0x8] sm:$0xff] }
   0x2   :  { %v13_v1 = vld [vmem:[%s61_s1] sm:$0xff]  ;;  %v15_v3 = vmul.f32 0.99, %v11_v0  ;;  %v14_v5 = vld [vmem:[%s61_s1 + $0x8] sm:$0xff]  ;;  %v16_v6 = vmul.f32 0.99, %v12_v2 }
   0x3   :  { %v17_v4 = vmul.f32 0.01, %v13_v1  ;;  %v18_v7 = vmul.f32 0.01, %v14_v5 }
   0x5   :  { %v19_v8 = vadd.f32 %v17_v4, %v15_v3  ;;  %v20_v9 = vadd.f32 %v18_v7, %v16_v6 }
   0x7   :  { %21 = vst [vmem:[%s62_s2] sm:$0xff] %v19_v8 }
   0x8   :  { %22 = vst [vmem:[%s62_s2 + $0x8] sm:$0xff] %v20_v9 }

</bundles_post_ra>
